<compile_context>
chip_gen: v5e
topology: v5e:2x2
jax: 0.10.0
libtpu: 0.0.40
codegen_flags: <defaults>
</compile_context>

<pallas_src>
import functools

import numpy as np
import jax
import jax.numpy as jnp
from jax import lax
from jax.experimental import pallas as pl
from jax.experimental.pallas import tpu as pltpu


def _bottleneck_kernel(feat_ref, x_ref, s1_ref, b1_ref, w1_ref, b2_ref,
                       w2_ref, m_ref, out_ref, *, W):
    # feat_ref : (N, G+Cin, HW) HBM, aliased to the output; already holds x in rows
    #            [G:] — never touched here (kernel writes only the G new rows).
    # x_ref    : (1, Cin, HW)   one image, channels on sublanes, spatial on lanes
    # s1, b1   : (Cin, 1)       folded BN1 scale / bias
    # w1_ref   : (C4, Cin) bf16 1x1 conv weight^T with BN2 scale folded in
    # b2       : (C4, 1)        folded BN2 bias
    # w2_ref   : (9, G, C4) bf16  3x3 conv weight, tap-major (tap = dy*3+dx)
    # m_ref    : (9, HW) f32    zero-padding boundary mask per tap
    # out_ref  : (1, G, HW)     the G new channels of this image
    del feat_ref  # x passthrough already lives in the aliased output buffer.

    HW = x_ref.shape[2]
    G = w2_ref.shape[1]

    x = x_ref[0]                                                    # (Cin, HW) f32

    # BN1 (folded, inference) + ReLU.
    t1 = jnp.maximum(x * s1_ref[...] + b1_ref[...], 0.0)

    # 1x1 conv (BN2 scale pre-folded into the weight) -> + bias2 -> ReLU.
    h = jnp.dot(w1_ref[...], t1.astype(jnp.bfloat16),
                preferred_element_type=jnp.float32)                 # (C4, HW) f32
    h = jnp.maximum(h + b2_ref[...], 0.0)

    # 3x3 conv, padding=1: accumulate 9 taps (lane roll + constant boundary mask +
    # one small matmul each).  Peak live data is a single (C4, HW) tap.
    conv = jnp.zeros((G, HW), jnp.float32)
    for dy in range(3):
        for dx in range(3):
            t = dy * 3 + dx
            shift = (dy - 1) * W + (dx - 1)
            if shift == 0:
                tap = h                                             # center tap
            else:
                # rolled[:, i] = h[:, (i + shift) mod HW]; mask zeroes out-of-image taps.
                rolled = pltpu.roll(h, shift=(-shift) % HW, axis=1)
                tap = rolled * m_ref[pl.ds(t, 1), :]
            conv = conv + jnp.dot(w2_ref[t], tap.astype(jnp.bfloat16),
                                  preferred_element_type=jnp.float32)

    out_ref[0, :, :] = conv.astype(out_ref.dtype)


def bottleneck_forward(x_nchw, scale1, bias1, w1, scale2, bias2, w2):
    """x_nchw: (N, Cin, H, W) f32.  w1: (Cin, 4*growth) 1x1 weight (in, out).
    w2: (3, 3, 4*growth, growth) HWIO.  Returns (N, growth + Cin, H, W)."""
    N, Cin, H, W = x_nchw.shape
    C4 = w1.shape[1]
    G = w2.shape[3]
    HW = H * W

    x2 = x_nchw.reshape(N, Cin, HW)                      # free reshape (NCHW is HW-contig)

    # Fold BN2's scale into the 1x1 weight (linear; ReLU comes after the bias add).
    w1t_scaled = (scale2[:, None] * w1.T).astype(jnp.bfloat16)               # (C4, Cin)
    # 3x3 weight as (tap, G, C4): each tap row is a ready matmul operand.
    w2_taps = jnp.transpose(w2, (0, 1, 3, 2)).reshape(9, G, C4).astype(jnp.bfloat16)

    # Trace-time constant boundary masks (zero padding) for the 9 taps.
    yy, xx = np.divmod(np.arange(HW), W)
    masks_np = np.ones((9, HW), np.float32)
    for dy in range(3):
        for dx in range(3):
            oy, ox = dy - 1, dx - 1
            valid = ((yy + oy >= 0) & (yy + oy < H) &
                     (xx + ox >= 0) & (xx + ox < W))
            masks_np[dy * 3 + dx] = valid.astype(np.float32)
    masks = jnp.asarray(masks_np)

    # Pre-place x into the concat/feature buffer (rows [G:]); the kernel writes only
    # rows [:G] through the aliased output, so x never round-trips through the kernel.
    feat = jnp.pad(x2, ((0, 0), (G, 0), (0, 0)))         # (N, G+Cin, HW)

    kernel = functools.partial(_bottleneck_kernel, W=W)

    out = pl.pallas_call(
        kernel,
        out_shape=jax.ShapeDtypeStruct((N, G + Cin, HW), x_nchw.dtype),
        grid=(N,),
        in_specs=[
            pl.BlockSpec(memory_space=pl.ANY),                 # feature buffer (aliased)
            pl.BlockSpec((1, Cin, HW), lambda n: (n, 0, 0)),   # x (one image per step)
            pl.BlockSpec((Cin, 1), lambda n: (0, 0)),          # BN1 scale
            pl.BlockSpec((Cin, 1), lambda n: (0, 0)),          # BN1 bias
            pl.BlockSpec((C4, Cin), lambda n: (0, 0)),         # 1x1 weight^T (BN2-scaled)
            pl.BlockSpec((C4, 1), lambda n: (0, 0)),           # BN2 bias
            pl.BlockSpec((9, G, C4), lambda n: (0, 0, 0)),     # 3x3 weight taps
            pl.BlockSpec((9, HW), lambda n: (0, 0)),           # boundary masks
        ],
        out_specs=pl.BlockSpec((1, G, HW), lambda n: (n, 0, 0)),
        input_output_aliases={0: 0},
        compiler_params=pltpu.CompilerParams(
            dimension_semantics=("parallel",),
            vmem_limit_bytes=32 * 1024 * 1024),
    )(feat, x2, scale1.reshape(Cin, 1), bias1.reshape(Cin, 1),
      w1t_scaled, bias2.reshape(C4, 1), w2_taps, masks)

    return out.reshape(N, G + Cin, H, W)                 # free reshape back to NCHW


def _reference(x_nchw, scale1, bias1, w1, scale2, bias2, w2):
    """Pure-JAX reference (mirrors the PyTorch forward, BN in inference form)."""
    t = jnp.maximum(x_nchw * scale1[None, :, None, None]
                    + bias1[None, :, None, None], 0.0)
    h = lax.conv_general_dilated(
        t, w1[None, None, :, :], (1, 1), "VALID",
        dimension_numbers=("NCHW", "HWIO", "NCHW"),
        precision=lax.Precision.HIGHEST)
    h = jnp.maximum(h * scale2[None, :, None, None]
                    + bias2[None, :, None, None], 0.0)
    o = lax.conv_general_dilated(
        h, w2, (1, 1), ((1, 1), (1, 1)),
        dimension_numbers=("NCHW", "HWIO", "NCHW"),
        precision=lax.Precision.HIGHEST)
    return jnp.concatenate([o, x_nchw], axis=1)


if __name__ == "__main__":
    # Small shapes consistent with the module: Bottleneck(in_planes=4, growth_rate=8)
    N, Cin, H, W = 2, 4, 16, 16
    growth = 8
    C4 = 4 * growth

    key = jax.random.PRNGKey(0)
    kx, kw1, kw2, kg1, kb1, km1, kv1, kg2, kb2, km2, kv2 = jax.random.split(key, 11)

    x = jax.random.normal(kx, (N, Cin, H, W), jnp.float32)

    # conv weights (stored IO / HWIO so they feed the matmul-style kernel directly)
    w1 = 0.1 * jax.random.normal(kw1, (Cin, C4), jnp.float32)            # 1x1 conv (in, out)
    w2 = 0.1 * jax.random.normal(kw2, (3, 3, C4, growth), jnp.float32)   # 3x3 conv, HWIO

    # deterministic BatchNorm parameters (inference mode), folded to scale/bias
    eps = 1e-5
    gamma1 = 1.0 + 0.1 * jax.random.normal(kg1, (Cin,), jnp.float32)
    beta1 = 0.1 * jax.random.normal(kb1, (Cin,), jnp.float32)
    mean1 = 0.1 * jax.random.normal(km1, (Cin,), jnp.float32)
    var1 = 1.0 + 0.1 * jax.random.uniform(kv1, (Cin,), jnp.float32)
    gamma2 = 1.0 + 0.1 * jax.random.normal(kg2, (C4,), jnp.float32)
    beta2 = 0.1 * jax.random.normal(kb2, (C4,), jnp.float32)
    mean2 = 0.1 * jax.random.normal(km2, (C4,), jnp.float32)
    var2 = 1.0 + 0.1 * jax.random.uniform(kv2, (C4,), jnp.float32)

    scale1 = gamma1 / jnp.sqrt(var1 + eps)
    bias1 = beta1 - mean1 * scale1
    scale2 = gamma2 / jnp.sqrt(var2 + eps)
    bias2 = beta2 - mean2 * scale2

    fwd = jax.jit(bottleneck_forward)
    out = fwd(x, scale1, bias1, w1, scale2, bias2, w2)
    out = jax.block_until_ready(out)

    ref = _reference(x, scale1, bias1, w1, scale2, bias2, w2)
    assert out.shape == (N, growth + Cin, H, W), out.shape
    # Kernel uses bf16 MXU operands (f32 accumulation) vs HIGHEST-precision reference:
    # loosen tolerance accordingly.
    max_err = float(jnp.max(jnp.abs(out - ref)))
    assert jnp.allclose(out, ref, atol=3e-2, rtol=3e-2), max_err

    print("KERNEL_OK")
</pallas_src>

<mosaic_0001>
module attributes {stable_mosaic.version = 11 : i64} {
  func.func @_bottleneck_kernel(%arg0: i32, %arg1: memref<2x12x256xf32, #tpu.memory_space<any>>, %arg2: memref<1x4x256xf32, #tpu.memory_space<vmem>>, %arg3: memref<4x1xf32, #tpu.memory_space<vmem>>, %arg4: memref<4x1xf32, #tpu.memory_space<vmem>>, %arg5: memref<32x4xbf16, #tpu.memory_space<vmem>>, %arg6: memref<32x1xf32, #tpu.memory_space<vmem>>, %arg7: memref<9x8x32xbf16, #tpu.memory_space<vmem>>, %arg8: memref<9x256xf32, #tpu.memory_space<vmem>>, %arg9: memref<1x8x256xf32, #tpu.memory_space<vmem>>) attributes {dimension_semantics = [#tpu.dimension_semantics<parallel>], iteration_bounds = array<i64: 2>, scalar_prefetch = 0 : i64, scratch_operands = 0 : i64, tpu.core_type = #tpu.core_type<tc>, window_params = [{}, {transform_indices = @transform_1, window_bounds = array<i64: 1, 4, 256>}, {pipeline_mode = #tpu.pipeline_mode<synchronous>, transform_indices = @transform_2, window_bounds = array<i64: 4, 1>}, {pipeline_mode = #tpu.pipeline_mode<synchronous>, transform_indices = @transform_3, window_bounds = array<i64: 4, 1>}, {pipeline_mode = #tpu.pipeline_mode<synchronous>, transform_indices = @transform_4, window_bounds = array<i64: 32, 4>}, {pipeline_mode = #tpu.pipeline_mode<synchronous>, transform_indices = @transform_5, window_bounds = array<i64: 32, 1>}, {pipeline_mode = #tpu.pipeline_mode<synchronous>, transform_indices = @transform_6, window_bounds = array<i64: 9, 8, 32>}, {pipeline_mode = #tpu.pipeline_mode<synchronous>, transform_indices = @transform_7, window_bounds = array<i64: 9, 256>}, {transform_indices = @transform_8, window_bounds = array<i64: 1, 8, 256>}]} {
    %c0 = arith.constant 0 : index
    %c0_0 = arith.constant 0 : index
    %c0_1 = arith.constant 0 : index
    %0 = vector.load %arg2[%c0, %c0_0, %c0_1] : memref<1x4x256xf32, #tpu.memory_space<vmem>>, vector<1x4x256xf32>
    %1 = vector.shape_cast %0 : vector<1x4x256xf32> to vector<4x256xf32>
    %c0_2 = arith.constant 0 : index
    %c0_3 = arith.constant 0 : index
    %2 = vector.load %arg3[%c0_2, %c0_3] : memref<4x1xf32, #tpu.memory_space<vmem>>, vector<4x1xf32>
    %3 = vector.broadcast %2 : vector<4x1xf32> to vector<4x256xf32>
    %4 = arith.mulf %1, %3 : vector<4x256xf32>
    %c0_4 = arith.constant 0 : index
    %c0_5 = arith.constant 0 : index
    %5 = vector.load %arg4[%c0_4, %c0_5] : memref<4x1xf32, #tpu.memory_space<vmem>>, vector<4x1xf32>
    %6 = vector.broadcast %5 : vector<4x1xf32> to vector<4x256xf32>
    %7 = arith.addf %4, %6 : vector<4x256xf32>
    %cst = arith.constant 0.000000e+00 : f32
    %8 = vector.broadcast %cst : f32 to vector<4x256xf32>
    %9 = arith.maximumf %7, %8 : vector<4x256xf32>
    %c0_6 = arith.constant 0 : index
    %c0_7 = arith.constant 0 : index
    %10 = vector.load %arg5[%c0_6, %c0_7] : memref<32x4xbf16, #tpu.memory_space<vmem>>, vector<32x4xbf16>
    %11 = arith.truncf %9 : vector<4x256xf32> to vector<4x256xbf16>
    %cst_8 = arith.constant dense<0.000000e+00> : vector<32x256xf32>
    %12 = tpu.matmul %10, %11, %cst_8 {dimension_numbers = #tpu.dot_dimension_numbers<[1], [0], [0], [1], [0, 0, 1, 1], [], []>} : vector<32x4xbf16>, vector<4x256xbf16>, vector<32x256xf32> -> vector<32x256xf32>
    %c0_9 = arith.constant 0 : index
    %c0_10 = arith.constant 0 : index
    %13 = vector.load %arg6[%c0_9, %c0_10] : memref<32x1xf32, #tpu.memory_space<vmem>>, vector<32x1xf32>
    %14 = vector.broadcast %13 : vector<32x1xf32> to vector<32x256xf32>
    %15 = arith.addf %12, %14 : vector<32x256xf32>
    %cst_11 = arith.constant 0.000000e+00 : f32
    %16 = vector.broadcast %cst_11 : f32 to vector<32x256xf32>
    %17 = arith.maximumf %15, %16 : vector<32x256xf32>
    %cst_12 = arith.constant 0.000000e+00 : f32
    %18 = vector.broadcast %cst_12 : f32 to vector<8x256xf32>
    %c17_i32 = arith.constant 17 : i32
    %19 = tpu.dynamic_rotate %17 by %c17_i32 dim 1 : vector<32x256xf32>, i32 -> vector<32x256xf32>
    %c0_13 = arith.constant 0 : index
    %c0_14 = arith.constant 0 : index
    %20 = vector.load %arg8[%c0_13, %c0_14] : memref<9x256xf32, #tpu.memory_space<vmem>>, vector<1x256xf32>
    %21 = vector.broadcast %20 : vector<1x256xf32> to vector<32x256xf32>
    %22 = arith.mulf %19, %21 : vector<32x256xf32>
    %c0_15 = arith.constant 0 : index
    %c0_16 = arith.constant 0 : index
    %c0_17 = arith.constant 0 : index
    %23 = vector.load %arg7[%c0_15, %c0_16, %c0_17] : memref<9x8x32xbf16, #tpu.memory_space<vmem>>, vector<1x8x32xbf16>
    %24 = vector.shape_cast %23 : vector<1x8x32xbf16> to vector<8x32xbf16>
    %25 = arith.truncf %22 : vector<32x256xf32> to vector<32x256xbf16>
    %cst_18 = arith.constant dense<0.000000e+00> : vector<8x256xf32>
    %26 = tpu.matmul %24, %25, %cst_18 {dimension_numbers = #tpu.dot_dimension_numbers<[1], [0], [0], [1], [0, 0, 1, 1], [], []>} : vector<8x32xbf16>, vector<32x256xbf16>, vector<8x256xf32> -> vector<8x256xf32>
    %27 = arith.addf %18, %26 : vector<8x256xf32>
    %c16_i32 = arith.constant 16 : i32
    %28 = tpu.dynamic_rotate %17 by %c16_i32 dim 1 : vector<32x256xf32>, i32 -> vector<32x256xf32>
    %c1 = arith.constant 1 : index
    %c0_19 = arith.constant 0 : index
    %29 = vector.load %arg8[%c1, %c0_19] : memref<9x256xf32, #tpu.memory_space<vmem>>, vector<1x256xf32>
    %30 = vector.broadcast %29 : vector<1x256xf32> to vector<32x256xf32>
    %31 = arith.mulf %28, %30 : vector<32x256xf32>
    %c1_20 = arith.constant 1 : index
    %c0_21 = arith.constant 0 : index
    %c0_22 = arith.constant 0 : index
    %32 = vector.load %arg7[%c1_20, %c0_21, %c0_22] : memref<9x8x32xbf16, #tpu.memory_space<vmem>>, vector<1x8x32xbf16>
    %33 = vector.shape_cast %32 : vector<1x8x32xbf16> to vector<8x32xbf16>
    %34 = arith.truncf %31 : vector<32x256xf32> to vector<32x256xbf16>
    %cst_23 = arith.constant dense<0.000000e+00> : vector<8x256xf32>
    %35 = tpu.matmul %33, %34, %cst_23 {dimension_numbers = #tpu.dot_dimension_numbers<[1], [0], [0], [1], [0, 0, 1, 1], [], []>} : vector<8x32xbf16>, vector<32x256xbf16>, vector<8x256xf32> -> vector<8x256xf32>
    %36 = arith.addf %27, %35 : vector<8x256xf32>
    %c15_i32 = arith.constant 15 : i32
    %37 = tpu.dynamic_rotate %17 by %c15_i32 dim 1 : vector<32x256xf32>, i32 -> vector<32x256xf32>
    %c2 = arith.constant 2 : index
    %c0_24 = arith.constant 0 : index
    %38 = vector.load %arg8[%c2, %c0_24] : memref<9x256xf32, #tpu.memory_space<vmem>>, vector<1x256xf32>
    %39 = vector.broadcast %38 : vector<1x256xf32> to vector<32x256xf32>
    %40 = arith.mulf %37, %39 : vector<32x256xf32>
    %c2_25 = arith.constant 2 : index
    %c0_26 = arith.constant 0 : index
    %c0_27 = arith.constant 0 : index
    %41 = vector.load %arg7[%c2_25, %c0_26, %c0_27] : memref<9x8x32xbf16, #tpu.memory_space<vmem>>, vector<1x8x32xbf16>
    %42 = vector.shape_cast %41 : vector<1x8x32xbf16> to vector<8x32xbf16>
    %43 = arith.truncf %40 : vector<32x256xf32> to vector<32x256xbf16>
    %cst_28 = arith.constant dense<0.000000e+00> : vector<8x256xf32>
    %44 = tpu.matmul %42, %43, %cst_28 {dimension_numbers = #tpu.dot_dimension_numbers<[1], [0], [0], [1], [0, 0, 1, 1], [], []>} : vector<8x32xbf16>, vector<32x256xbf16>, vector<8x256xf32> -> vector<8x256xf32>
    %45 = arith.addf %36, %44 : vector<8x256xf32>
    %c1_i32 = arith.constant 1 : i32
    %46 = tpu.dynamic_rotate %17 by %c1_i32 dim 1 : vector<32x256xf32>, i32 -> vector<32x256xf32>
    %c3 = arith.constant 3 : index
    %c0_29 = arith.constant 0 : index
    %47 = vector.load %arg8[%c3, %c0_29] : memref<9x256xf32, #tpu.memory_space<vmem>>, vector<1x256xf32>
    %48 = vector.broadcast %47 : vector<1x256xf32> to vector<32x256xf32>
    %49 = arith.mulf %46, %48 : vector<32x256xf32>
    %c3_30 = arith.constant 3 : index
    %c0_31 = arith.constant 0 : index
    %c0_32 = arith.constant 0 : index
    %50 = vector.load %arg7[%c3_30, %c0_31, %c0_32] : memref<9x8x32xbf16, #tpu.memory_space<vmem>>, vector<1x8x32xbf16>
    %51 = vector.shape_cast %50 : vector<1x8x32xbf16> to vector<8x32xbf16>
    %52 = arith.truncf %49 : vector<32x256xf32> to vector<32x256xbf16>
    %cst_33 = arith.constant dense<0.000000e+00> : vector<8x256xf32>
    %53 = tpu.matmul %51, %52, %cst_33 {dimension_numbers = #tpu.dot_dimension_numbers<[1], [0], [0], [1], [0, 0, 1, 1], [], []>} : vector<8x32xbf16>, vector<32x256xbf16>, vector<8x256xf32> -> vector<8x256xf32>
    %54 = arith.addf %45, %53 : vector<8x256xf32>
    %c4 = arith.constant 4 : index
    %c0_34 = arith.constant 0 : index
    %c0_35 = arith.constant 0 : index
    %55 = vector.load %arg7[%c4, %c0_34, %c0_35] : memref<9x8x32xbf16, #tpu.memory_space<vmem>>, vector<1x8x32xbf16>
    %56 = vector.shape_cast %55 : vector<1x8x32xbf16> to vector<8x32xbf16>
    %57 = arith.truncf %17 : vector<32x256xf32> to vector<32x256xbf16>
    %cst_36 = arith.constant dense<0.000000e+00> : vector<8x256xf32>
    %58 = tpu.matmul %56, %57, %cst_36 {dimension_numbers = #tpu.dot_dimension_numbers<[1], [0], [0], [1], [0, 0, 1, 1], [], []>} : vector<8x32xbf16>, vector<32x256xbf16>, vector<8x256xf32> -> vector<8x256xf32>
    %59 = arith.addf %54, %58 : vector<8x256xf32>
    %c255_i32 = arith.constant 255 : i32
    %60 = tpu.dynamic_rotate %17 by %c255_i32 dim 1 : vector<32x256xf32>, i32 -> vector<32x256xf32>
    %c5 = arith.constant 5 : index
    %c0_37 = arith.constant 0 : index
    %61 = vector.load %arg8[%c5, %c0_37] : memref<9x256xf32, #tpu.memory_space<vmem>>, vector<1x256xf32>
    %62 = vector.broadcast %61 : vector<1x256xf32> to vector<32x256xf32>
    %63 = arith.mulf %60, %62 : vector<32x256xf32>
    %c5_38 = arith.constant 5 : index
    %c0_39 = arith.constant 0 : index
    %c0_40 = arith.constant 0 : index
    %64 = vector.load %arg7[%c5_38, %c0_39, %c0_40] : memref<9x8x32xbf16, #tpu.memory_space<vmem>>, vector<1x8x32xbf16>
    %65 = vector.shape_cast %64 : vector<1x8x32xbf16> to vector<8x32xbf16>
    %66 = arith.truncf %63 : vector<32x256xf32> to vector<32x256xbf16>
    %cst_41 = arith.constant dense<0.000000e+00> : vector<8x256xf32>
    %67 = tpu.matmul %65, %66, %cst_41 {dimension_numbers = #tpu.dot_dimension_numbers<[1], [0], [0], [1], [0, 0, 1, 1], [], []>} : vector<8x32xbf16>, vector<32x256xbf16>, vector<8x256xf32> -> vector<8x256xf32>
    %68 = arith.addf %59, %67 : vector<8x256xf32>
    %c241_i32 = arith.constant 241 : i32
    %69 = tpu.dynamic_rotate %17 by %c241_i32 dim 1 : vector<32x256xf32>, i32 -> vector<32x256xf32>
    %c6 = arith.constant 6 : index
    %c0_42 = arith.constant 0 : index
    %70 = vector.load %arg8[%c6, %c0_42] : memref<9x256xf32, #tpu.memory_space<vmem>>, vector<1x256xf32>
    %71 = vector.broadcast %70 : vector<1x256xf32> to vector<32x256xf32>
    %72 = arith.mulf %69, %71 : vector<32x256xf32>
    %c6_43 = arith.constant 6 : index
    %c0_44 = arith.constant 0 : index
    %c0_45 = arith.constant 0 : index
    %73 = vector.load %arg7[%c6_43, %c0_44, %c0_45] : memref<9x8x32xbf16, #tpu.memory_space<vmem>>, vector<1x8x32xbf16>
    %74 = vector.shape_cast %73 : vector<1x8x32xbf16> to vector<8x32xbf16>
    %75 = arith.truncf %72 : vector<32x256xf32> to vector<32x256xbf16>
    %cst_46 = arith.constant dense<0.000000e+00> : vector<8x256xf32>
    %76 = tpu.matmul %74, %75, %cst_46 {dimension_numbers = #tpu.dot_dimension_numbers<[1], [0], [0], [1], [0, 0, 1, 1], [], []>} : vector<8x32xbf16>, vector<32x256xbf16>, vector<8x256xf32> -> vector<8x256xf32>
    %77 = arith.addf %68, %76 : vector<8x256xf32>
    %c240_i32 = arith.constant 240 : i32
    %78 = tpu.dynamic_rotate %17 by %c240_i32 dim 1 : vector<32x256xf32>, i32 -> vector<32x256xf32>
    %c7 = arith.constant 7 : index
    %c0_47 = arith.constant 0 : index
    %79 = vector.load %arg8[%c7, %c0_47] : memref<9x256xf32, #tpu.memory_space<vmem>>, vector<1x256xf32>
    %80 = vector.broadcast %79 : vector<1x256xf32> to vector<32x256xf32>
    %81 = arith.mulf %78, %80 : vector<32x256xf32>
    %c7_48 = arith.constant 7 : index
    %c0_49 = arith.constant 0 : index
    %c0_50 = arith.constant 0 : index
    %82 = vector.load %arg7[%c7_48, %c0_49, %c0_50] : memref<9x8x32xbf16, #tpu.memory_space<vmem>>, vector<1x8x32xbf16>
    %83 = vector.shape_cast %82 : vector<1x8x32xbf16> to vector<8x32xbf16>
    %84 = arith.truncf %81 : vector<32x256xf32> to vector<32x256xbf16>
    %cst_51 = arith.constant dense<0.000000e+00> : vector<8x256xf32>
    %85 = tpu.matmul %83, %84, %cst_51 {dimension_numbers = #tpu.dot_dimension_numbers<[1], [0], [0], [1], [0, 0, 1, 1], [], []>} : vector<8x32xbf16>, vector<32x256xbf16>, vector<8x256xf32> -> vector<8x256xf32>
    %86 = arith.addf %77, %85 : vector<8x256xf32>
    %c239_i32 = arith.constant 239 : i32
    %87 = tpu.dynamic_rotate %17 by %c239_i32 dim 1 : vector<32x256xf32>, i32 -> vector<32x256xf32>
    %c8 = arith.constant 8 : index
    %c0_52 = arith.constant 0 : index
    %88 = vector.load %arg8[%c8, %c0_52] : memref<9x256xf32, #tpu.memory_space<vmem>>, vector<1x256xf32>
    %89 = vector.broadcast %88 : vector<1x256xf32> to vector<32x256xf32>
    %90 = arith.mulf %87, %89 : vector<32x256xf32>
    %c8_53 = arith.constant 8 : index
    %c0_54 = arith.constant 0 : index
    %c0_55 = arith.constant 0 : index
    %91 = vector.load %arg7[%c8_53, %c0_54, %c0_55] : memref<9x8x32xbf16, #tpu.memory_space<vmem>>, vector<1x8x32xbf16>
    %92 = vector.shape_cast %91 : vector<1x8x32xbf16> to vector<8x32xbf16>
    %93 = arith.truncf %90 : vector<32x256xf32> to vector<32x256xbf16>
    %cst_56 = arith.constant dense<0.000000e+00> : vector<8x256xf32>
    %94 = tpu.matmul %92, %93, %cst_56 {dimension_numbers = #tpu.dot_dimension_numbers<[1], [0], [0], [1], [0, 0, 1, 1], [], []>} : vector<8x32xbf16>, vector<32x256xbf16>, vector<8x256xf32> -> vector<8x256xf32>
    %95 = arith.addf %86, %94 : vector<8x256xf32>
    %c0_57 = arith.constant 0 : index
    %c0_58 = arith.constant 0 : index
    %c0_59 = arith.constant 0 : index
    %96 = vector.load %arg9[%c0_57, %c0_58, %c0_59] : memref<1x8x256xf32, #tpu.memory_space<vmem>>, vector<1x8x256xf32>
    %97 = vector.shape_cast %96 : vector<1x8x256xf32> to vector<8x256xf32>
    %98 = vector.shape_cast %95 : vector<8x256xf32> to vector<1x8x256xf32>
    tpu.vector_store %arg9[%c0_57, %c0_58, %c0_59], %98 {strides = array<i32>} : memref<1x8x256xf32, #tpu.memory_space<vmem>>, vector<1x8x256xf32>,
    return
  }
  func.func @transform_1(%arg0: i32) -> (i32, i32, i32) {
    %c0_i32 = arith.constant 0 : i32
    %c0_i32_0 = arith.constant 0 : i32
    %c0_i32_1 = arith.constant 0 : i32
    return %arg0, %c0_i32, %c0_i32_0 : i32, i32, i32
  }
  func.func @transform_2(%arg0: i32) -> (i32, i32) {
    %c0_i32 = arith.constant 0 : i32
    %c0_i32_0 = arith.constant 0 : i32
    %c0_i32_1 = arith.constant 0 : i32
    return %c0_i32, %c0_i32_0 : i32, i32
  }
  func.func @transform_3(%arg0: i32) -> (i32, i32) {
    %c0_i32 = arith.constant 0 : i32
    %c0_i32_0 = arith.constant 0 : i32
    %c0_i32_1 = arith.constant 0 : i32
    return %c0_i32, %c0_i32_0 : i32, i32
  }
  func.func @transform_4(%arg0: i32) -> (i32, i32) {
    %c0_i32 = arith.constant 0 : i32
    %c0_i32_0 = arith.constant 0 : i32
    %c0_i32_1 = arith.constant 0 : i32
    return %c0_i32, %c0_i32_0 : i32, i32
  }
  func.func @transform_5(%arg0: i32) -> (i32, i32) {
    %c0_i32 = arith.constant 0 : i32
    %c0_i32_0 = arith.constant 0 : i32
    %c0_i32_1 = arith.constant 0 : i32
    return %c0_i32, %c0_i32_0 : i32, i32
  }
  func.func @transform_6(%arg0: i32) -> (i32, i32, i32) {
    %c0_i32 = arith.constant 0 : i32
    %c0_i32_0 = arith.constant 0 : i32
    %c0_i32_1 = arith.constant 0 : i32
    %c0_i32_2 = arith.constant 0 : i32
    return %c0_i32, %c0_i32_0, %c0_i32_1 : i32, i32, i32
  }
  func.func @transform_7(%arg0: i32) -> (i32, i32) {
    %c0_i32 = arith.constant 0 : i32
    %c0_i32_0 = arith.constant 0 : i32
    %c0_i32_1 = arith.constant 0 : i32
    return %c0_i32, %c0_i32_0 : i32, i32
  }
  func.func @transform_8(%arg0: i32) -> (i32, i32, i32) {
    %c0_i32 = arith.constant 0 : i32
    %c0_i32_0 = arith.constant 0 : i32
    %c0_i32_1 = arith.constant 0 : i32
    return %arg0, %c0_i32, %c0_i32_0 : i32, i32, i32
  }
}

</mosaic_0001>

<bundles_post_ra>
// kernel: bottleneck_forward.1
= control target key start
LH: loop header
LB: loop body
LE: loop exit
PB: predicated region body
PF: predicated region fallthrough
CT: control target
= control target key end

     0   :  { %s1262_s26 = smov 0   ;;  %s1886_s0 = inlined_call_operand.vmem [shape: f32[2,12,256], index: 0, kind: input, shape index: {}, may-alias: {0,8}]   ;;  %s1887_s1 = inlined_call_operand.vmem [shape: f32[2,4,256], index: 1, kind: input, shape index: {}]   ;;  %s1888_s2 = inlined_call_operand.vmem [shape: f32[4,1], index: 2, kind: input, shape index: {}]   ;;  %s1889_s3 = inlined_call_operand.vmem [shape: f32[4,1], index: 3, kind: input, shape index: {}]   ;;  %s1890_s4 = inlined_call_operand.vmem [shape: bf16[32,4], index: 4, kind: input, shape index: {}]   ;;  %s1891_s5 = inlined_call_operand.vmem [shape: f32[32,1], index: 5, kind: input, shape index: {}]   ;;  %s1892_s6 = inlined_call_operand.vmem [shape: bf16[9,8,32], index: 6, kind: input, shape index: {}]   ;;  %s1893_s7 = inlined_call_operand.vmem [shape: f32[9,256], index: 7, kind: input, shape index: {}]   ;;  %s1894_s8 = inlined_call_operand.vmem [shape: f32[2,12,256], index: 8, kind: output, shape index: {}, may-alias: {0,8}]  }
   0x1 LB: > { %s1118_s27 = sadd.s32 4294967295, %s1205_s26   ;;  %p1122_p0 = scmp.ge.s32.totalorder %s1205_s26, 1  ;;  %s1205_s26 = sphi %s1262_s26, %s18_s26  }
   0x2   : > { %p238_p1 = scmp.lt.s32.totalorder %s1205_s26, 3 }
   0x4   : > { %p239_p2 = pnand %p1122_p0, %p238_p1 }
   0x6   : > { %242 = sbr.rel (%p239_p2) target bundleno = 711 (0x2c7), region = 48 }
   0xb   : > { %v282_v0 = vld [vmem:[%s1888_s2] sm:$0xf]  ;;  %v1207_v1 = vmov 0   ;;  %p270_p3 = scmp.lt.s32.totalorder %s1118_s27, 1  ;;  %v1208_v3 = vmov 839922192   ;;  %v427_v56 = vlaneseq }
   0xc   : > { %1196 = vset.pattern.permute.xlu0 %v1207_v1  ;;  %1198 = vset.pattern.permute.xlu2 %v1207_v1  ;;  %v293_v2 = vld [vmem:[%s1889_s3] sm:$0xf]  ;;  %v288_v4 = vunpack.c.l.s4 %v1208_v3  ;;  %v318_v8 = vld [vmem:[%s1891_s5 + $0x8] sm:$0xff]  ;;  %v319_v16 = vld [vmem:[%s1891_s5 + $0x10] sm:$0xff]  ;;  %vm358_vm0 = vcmask 1041408   ;;  %vm351_vm1 = vcmask 31744  }
   0xd   : > { %285 = vperm.xlu0 %1196, %v282_v0   ;;  %1197 = vset.pattern.permute.xlu1 %v1207_v1  ;;  %s1915_s27 = smov (!%p270_p3, %s1118_s27), 1  ;;  %v317_v5 = vld [vmem:[%s1891_s5] sm:$0xff]  ;;  %v320_v17 = vld [vmem:[%s1891_s5 + $0x18] sm:$0xff]  ;;  %v1177_v25 = vld [vmem:[%s1890_s4 + $0x8] sm:$0xff]  ;;  %s1209_s25 = smov 17   ;;  %v1400_v58 = vand.u32 127, %v427_v56 }
   0xe   : > { %323 = vperm.xlu2 %1198, %v317_v5   ;;  %s1174_s12 = sshll.u32 %s1915_s27, 3  ;;  %v289_v7 = vunpack.c.0.s8 %v288_v4  ;;  %333 = vperm.xlu1 %1197, %v319_v16   ;;  %v1176_v24 = vld [vmem:[%s1890_s4] sm:$0xff]  ;;  %s1210_s28 = smov 16   ;;  %vm503_vm7 = vcmask 261120  }
   0xf   : > { %s274_s15 = scalar_lea.vmem %s1887_s1, %s1174_s12  ;;  %s1211_s29 = smov 15   ;;  %vm473_vm2 = vcmp.lt.s32.totalorder %v1400_v58, 16  ;;  %vm429_vm3 = vcmp.lt.s32.totalorder %v1400_v58, 17  ;;  %vm578_vm4 = vcmp.lt.s32.totalorder %v1400_v58, 15  ;;  %vm655_vm5 = vcmp.lt.s32.totalorder %v1400_v58, 1 }
  0x10   : > { %v281_v10 = vld [vmem:[%s274_s15] sm:$0xff]  ;;  %s1212_s30 = smov 127   ;;  %s1213_s9 = smov 1   ;;  %vm769_vm6 = vcmp.lt.s32.totalorder %v1400_v58, 127  ;;  %vm846_vm8 = vcmp.lt.s32.totalorder %v1400_v58, 113  ;;  %vm923_vm9 = vcmp.lt.s32.totalorder %v1400_v58, 112 }
  0x11   : > { %s1214_s10 = smov 113   ;;  %s1215_s11 = smov 112   ;;  %vm1000_vm10 = vcmp.lt.s32.totalorder %v1400_v58, 111 }
  0x12   : > { %s1216_s16 = smov 111  }
  0x15   : > { %296 = vperm.xlu0 %1196, %v293_v2  }
  0x16   : > { %328 = vperm.xlu2 %1198, %v318_v8   ;;  %338 = vperm.xlu1 %1197, %v320_v17  }
  0x68   : > { %v324_v26 = vpop.permute.xlu2 %323 }
  0x70   : > { %v329_v35 = vpop.permute.xlu2 %328 }
  0x7f   : > { %v286_v6 = vpop.permute.xlu0 %285 }
  0x80   : > { %v290_v9 = vperm.slane %v286_v6, %v289_v7  ;;  %v334_v40 = vpop.permute.xlu1 %333 }
  0x82   : > { %v292_v12 = vmul.f32 %v290_v9, %v281_v10 }
  0x87   : > { %v297_v11 = vpop.permute.xlu0 %296 }
  0x88   : > { %v301_v13 = vperm.slane %v297_v11, %v289_v7  ;;  %v339_v47 = vpop.permute.xlu1 %338 }
  0x8a   : > { %v303_v14 = vadd.f32 %v301_v13, %v292_v12  ;;  %v1139_v12 = vld [vmem:[%s1893_s7 + $0x1] ss:$8 sm:$0x3] }
  0x8b   : > { %v1450_v13 = vperm.slane %v1139_v12, 0 }
  0x8c   : > { %v304_v15 = vmax.f32 %v303_v14, 0.0  ;;  %v1452_v14 = vperm.slane %v1139_v12, 1 }
  0x8e   : > { %310 = vst [vmem:[#allocation1] ss:$2 sm:$0xff] %v304_v15 }
  0x95   : > { %v311_v18 = vld.sshfl [vmem:[#allocation1] sm:$0xff pattern:$0x75316420]  ;;  %v312_v19 = vld.sshfl [vmem:[#allocation1 + $0x8] sm:$0xff pattern:$0x75316420] }
  0x96   : > { %v315_v20 = vpack.c.bf16 %v311_v18, %v311_v18  ;;  %v316_v21 = vpack.c.bf16 %v312_v19, %v312_v19 }
  0x98   : > { %v360_v22 = vsel %vm358_vm0, %v315_v20, 0  ;;  %v363_v23 = vsel %vm358_vm0, %v316_v21, 0 }
  0x99   : > { %372 = vmatpush.bf16.msra.mxu0 %v360_v22  ;;  %391 = vmatpush.bf16.msra.mxu1 %v363_v23 }
  0x9c   : > { %1135 = vmatmul.msk.bf16.vlgmr.msra.gmra.mxu0 %vm351_vm1, %v1176_v24  ;;  %1137 = vmatmul.msk.bf16.vlgmr.msra.gmra.mxu1 %vm351_vm1, %v1176_v24 }
  0xac   : > { %1136 = vmatmul.msk.bf16.gmra.mxu0 %vm351_vm1, %v1177_v25  ;;  %1138 = vmatmul.msk.bf16.gmra.mxu1 %vm351_vm1, %v1177_v25 }
 0x119   : > { %v374_v27 = vpop.f32.mrf.mxu0  ;;  %v393_v28 = vpop.f32.mrf.mxu1 }
 0x11a   : > { %v375_v29 = vadd.f32 %v374_v27, %v324_v26  ;;  %v394_v30 = vadd.f32 %v393_v28, %v324_v26  ;;  %v438_v26 = vld [vmem:[%s1893_s7] ss:$8 sm:$0x3] }
 0x11c   : > { %v1300_v31 = vmax.f32 %v375_v29, 0.0  ;;  %v1302_v32 = vmax.f32 %v394_v30, 0.0  ;;  %v1493_v29 = vperm.slane %v438_v26, 0  ;;  %v1495_v30 = vperm.slane %v438_v26, 1 }
 0x11e   : > { %419 = vrot.lane.b32.xlu2 %v1302_v32, %s1209_s25  ;;  %465 = vrot.lane.b32.xlu0 %v1302_v32, %s1210_s28 }
 0x11f   : > { %457 = vrot.lane.b32.xlu1 %v1300_v31, %s1210_s28 }
 0x121   : > { %v376_v33 = vpop.f32.mrf.mxu0  ;;  %v395_v34 = vpop.f32.mrf.mxu1 }
 0x122   : > { %v377_v36 = vadd.f32 %v376_v33, %v329_v35  ;;  %v396_v37 = vadd.f32 %v395_v34, %v329_v35  ;;  %v1145_v35 = vld [vmem:[%s1893_s7 + $0x2] ss:$8 sm:$0x3] }
 0x124   : > { %v1322_v38 = vmax.f32 %v377_v36, 0.0  ;;  %v1324_v39 = vmax.f32 %v396_v37, 0.0 }
 0x126   : > { %562 = vrot.lane.b32.xlu2 %v1300_v31, %s1211_s29  ;;  %411 = vrot.lane.b32.xlu0 %v1300_v31, %s1209_s25 }
 0x127   : > { %570 = vrot.lane.b32.xlu1 %v1302_v32, %s1211_s29 }
 0x129   : > { %v398_v41 = vpop.f32.mrf.mxu1  ;;  %v379_v44 = vpop.f32.mrf.mxu0 }
 0x12a   : > { %v399_v42 = vadd.f32 %v398_v41, %v334_v40  ;;  %v380_v45 = vadd.f32 %v379_v44, %v334_v40 }
 0x12c   : > { %v1344_v43 = vmax.f32 %v399_v42, 0.0  ;;  %v1352_v46 = vmax.f32 %v380_v45, 0.0  ;;  %v1149_v45 = vld [vmem:[%s1893_s7 + $0x3] ss:$8 sm:$0x3] }
 0x12e   : > { %761 = vrot.lane.b32.xlu2 %v1302_v32, %s1212_s30  ;;  %647 = vrot.lane.b32.xlu0 %v1302_v32, %s1213_s9 }
 0x12f   : > { %639 = vrot.lane.b32.xlu1 %v1300_v31, %s1213_s9 }
 0x131   : > { %v381_v48 = vpop.f32.mrf.mxu0  ;;  %v400_v51 = vpop.f32.mrf.mxu1 }
 0x132   : > { %v382_v49 = vadd.f32 %v381_v48, %v339_v47  ;;  %v401_v52 = vadd.f32 %v400_v51, %v339_v47  ;;  %v1523_v48 = vperm.slane %v1145_v35, 0 }
 0x134   : > { %v1372_v50 = vmax.f32 %v382_v49, 0.0  ;;  %v1380_v53 = vmax.f32 %v401_v52, 0.0  ;;  %v1525_v49 = vperm.slane %v1145_v35, 1 }
 0x136   : > { %459 = vrot.lane.b32.xlu2 %v1322_v38, %s1210_s28  ;;  %753 = vrot.lane.b32.xlu0 %v1300_v31, %s1212_s30 }
 0x137   : > { %467 = vrot.lane.b32.xlu1 %v1324_v39, %s1210_s28 }
 0x13e   : > { %572 = vrot.lane.b32.xlu2 %v1324_v39, %s1211_s29  ;;  %421 = vrot.lane.b32.xlu0 %v1324_v39, %s1209_s25 }
 0x13f   : > { %413 = vrot.lane.b32.xlu1 %v1322_v38, %s1209_s25 }
 0x146   : > { %641 = vrot.lane.b32.xlu2 %v1322_v38, %s1213_s9  ;;  %564 = vrot.lane.b32.xlu0 %v1322_v38, %s1211_s29 }
 0x147   : > { %649 = vrot.lane.b32.xlu1 %v1324_v39, %s1213_s9 }
 0x14e   : > { %469 = vrot.lane.b32.xlu2 %v1344_v43, %s1210_s28  ;;  %763 = vrot.lane.b32.xlu0 %v1324_v39, %s1212_s30 }
 0x14f   : > { %755 = vrot.lane.b32.xlu1 %v1322_v38, %s1212_s30 }
 0x156   : > { %415 = vrot.lane.b32.xlu2 %v1352_v46, %s1209_s25  ;;  %461 = vrot.lane.b32.xlu0 %v1352_v46, %s1210_s28 }
 0x157   : > { %423 = vrot.lane.b32.xlu1 %v1344_v43, %s1209_s25 }
 0x15e   : > { %651 = vrot.lane.b32.xlu2 %v1344_v43, %s1213_s9  ;;  %574 = vrot.lane.b32.xlu0 %v1344_v43, %s1211_s29 }
 0x15f   : > { %566 = vrot.lane.b32.xlu1 %v1352_v46, %s1211_s29 }
 0x166   : > { %757 = vrot.lane.b32.xlu2 %v1352_v46, %s1212_s30  ;;  %643 = vrot.lane.b32.xlu0 %v1352_v46, %s1213_s9 }
 0x167   : > { %765 = vrot.lane.b32.xlu1 %v1344_v43, %s1212_s30 }
 0x16e   : > { %830 = vrot.lane.b32.xlu2 %v1300_v31, %s1214_s10  ;;  %842 = vrot.lane.b32.xlu0 %v1344_v43, %s1214_s10 }
 0x16f   : > { %463 = vrot.lane.b32.xlu1 %v1372_v50, %s1210_s28 }
 0x176   : > { %840 = vrot.lane.b32.xlu2 %v1324_v39, %s1214_s10  ;;  %471 = vrot.lane.b32.xlu0 %v1380_v53, %s1210_s28 }
 0x177   : > { %834 = vrot.lane.b32.xlu1 %v1352_v46, %s1214_s10 }
 0x178   : > { %v420_v54 = vpop.permute.xlu2 %419 }
 0x17e   : > { %425 = vrot.lane.b32.xlu2 %v1380_v53, %s1209_s25  ;;  %832 = vrot.lane.b32.xlu0 %v1322_v38, %s1214_s10 }
 0x17f   : > { %838 = vrot.lane.b32.xlu1 %v1302_v32, %s1214_s10 }
 0x180   : > { %v563_v55 = vpop.permute.xlu2 %562 }
 0x186   : > { %568 = vrot.lane.b32.xlu2 %v1372_v50, %s1211_s29  ;;  %417 = vrot.lane.b32.xlu0 %v1372_v50, %s1209_s25  ;;  %s1175_s25 = sshll.u32 %s1915_s27, 5 }
 0x187   : > { %576 = vrot.lane.b32.xlu1 %v1380_v53, %s1211_s29 }
 0x188   : > { %v762_v57 = vpop.permute.xlu2 %761 }
 0x18e   : > { %919 = vrot.lane.b32.xlu2 %v1344_v43, %s1215_s11  ;;  %911 = vrot.lane.b32.xlu0 %v1352_v46, %s1215_s11 }
 0x18f   : > { %645 = vrot.lane.b32.xlu1 %v1372_v50, %s1213_s9 }
 0x190   : > { %v466_v59 = vpop.permute.xlu0 %465  ;;  %v460_v60 = vpop.permute.xlu2 %459 }
 0x191   : > { %v458_v61 = vpop.permute.xlu1 %457 }
 0x192   : > { %v474_v62 = vsel %vm473_vm2, %v458_v61, %v466_v59  ;;  %v478_v63 = vsel %vm473_vm2, %v466_v59, %v458_v61 }
 0x193   : > { %v1471_v22 = vmul.f32 %v1450_v13, %v478_v63  ;;  %v1474_v23 = vmul.f32 %v1452_v14, %v474_v62 }
 0x196   : > { %909 = vrot.lane.b32.xlu2 %v1322_v38, %s1215_s11  ;;  %653 = vrot.lane.b32.xlu0 %v1380_v53, %s1213_s9 }
 0x197   : > { %907 = vrot.lane.b32.xlu1 %v1300_v31, %s1215_s11 }
 0x198   : > { %v1421_v0 = vpop.permute.xlu2 %572  ;;  %v412_v1 = vpop.permute.xlu0 %411 }
 0x199   : > { %v430_v2 = vsel %vm429_vm3, %v412_v1, %v420_v54  ;;  %v434_v3 = vsel %vm429_vm3, %v420_v54, %v412_v1  ;;  %v571_v4 = vpop.permute.xlu1 %570  ;;  %v1535_v54 = vperm.slane %v1149_v45, 0 }
 0x19a   : > { %v579_v5 = vsel %vm578_vm4, %v563_v55, %v571_v4  ;;  %v583_v6 = vsel %vm578_vm4, %v571_v4, %v563_v55  ;;  %v1507_v40 = vmul.f32 %v1493_v29, %v434_v3  ;;  %v1510_v41 = vmul.f32 %v1495_v30, %v430_v2 }
 0x19b   : > { %v1537_v55 = vperm.slane %v1149_v45, 1  ;;  %v1545_v59 = vmul.f32 %v1525_v49, %v579_v5 }
 0x19e   : > { %767 = vrot.lane.b32.xlu2 %v1380_v53, %s1212_s30  ;;  %915 = vrot.lane.b32.xlu0 %v1302_v32, %s1215_s11 }
 0x19f   : > { %917 = vrot.lane.b32.xlu1 %v1324_v39, %s1215_s11 }
 0x1a0   : > { %v642_v7 = vpop.permute.xlu2 %641  ;;  %v648_v8 = vpop.permute.xlu0 %647 }
 0x1a1   : > { %v640_v9 = vpop.permute.xlu1 %639 }
 0x1a2   : > { %v656_v10 = vsel %vm655_vm5, %v640_v9, %v648_v8  ;;  %v660_v11 = vsel %vm655_vm5, %v648_v8, %v640_v9  ;;  %v1156_v8 = vld [vmem:[%s1893_s7 + $0x5] ss:$8 sm:$0x3] }
 0x1a3   : > { %v1564_v4 = vmul.f32 %v1535_v54, %v660_v11  ;;  %v1567_v5 = vmul.f32 %v1537_v55, %v656_v10 }
 0x1a6   : > { %836 = vrot.lane.b32.xlu2 %v1372_v50, %s1214_s10  ;;  %759 = vrot.lane.b32.xlu0 %v1372_v50, %s1212_s30  ;;  %s279_s30 = scalar_lea.vmem %s1894_s8, %s1175_s25 }
 0x1a7   : > { %844 = vrot.lane.b32.xlu1 %v1380_v53, %s1214_s10 }
 0x1a8   : > { %v754_v15 = vpop.permute.xlu0 %753  ;;  %v1464_v19 = vpop.permute.xlu2 %469 }
 0x1a9   : > { %v1458_v16 = vsel %vm769_vm6, %v754_v15, %v762_v57  ;;  %v1462_v17 = vsel %vm769_vm6, %v762_v57, %v754_v15  ;;  %v468_v18 = vpop.permute.xlu1 %467  ;;  %v1542_v57 = vmul.f32 %v1523_v48, %v583_v6  ;;  %v1592_v15 = vperm.slane %v1156_v8, 0 }
 0x1aa   : > { %v475_v20 = vsel %vm473_vm2, %v460_v60, %v468_v18  ;;  %v479_v21 = vsel %vm473_vm2, %v468_v18, %v460_v60  ;;  %v1594_v18 = vperm.slane %v1156_v8, 1 }
 0x1ab   : > { %v1477_v24 = vmul.f32 %v1450_v13, %v479_v21  ;;  %v1480_v25 = vmul.f32 %v1452_v14, %v475_v20 }
 0x1ac   : > { %v1608_v35 = vmul.f32 %v1594_v18, %v1462_v17 }
 0x1ae   : > { %988 = vrot.lane.b32.xlu2 %v1352_v46, %s1216_s16  ;;  %984 = vrot.lane.b32.xlu0 %v1300_v31, %s1216_s16  ;;  %1899 = vst [vmem:[#allocation3_spill] sm:$0xff] %v1608_v35 }
 0x1af   : > { %913 = vrot.lane.b32.xlu1 %v1372_v50, %s1215_s11 }
 0x1b0   : > { %v422_v33 = vpop.permute.xlu0 %421  ;;  %v1521_v47 = vpop.permute.xlu2 %415 }
 0x1b1   : > { %v414_v34 = vpop.permute.xlu1 %413 }
 0x1b2   : > { %v431_v36 = vsel %vm429_vm3, %v414_v34, %v422_v33  ;;  %v435_v37 = vsel %vm429_vm3, %v422_v33, %v414_v34  ;;  %v1604_v34 = vmul.f32 %v1592_v15, %v1458_v16 }
 0x1b3   : > { %v1513_v42 = vmul.f32 %v1493_v29, %v435_v37  ;;  %v1516_v44 = vmul.f32 %v1495_v30, %v431_v36 }
 0x1b4   : > { %1898 = vst [vmem:[#allocation2_spill] sm:$0xff] %v1604_v34 }
 0x1b6   : > { %998 = vrot.lane.b32.xlu2 %v1380_v53, %s1216_s16  ;;  %921 = vrot.lane.b32.xlu0 %v1380_v53, %s1215_s11 }
 0x1b7   : > { %996 = vrot.lane.b32.xlu1 %v1344_v43, %s1216_s16 }
 0x1b8   : > { %v565_v56 = vpop.permute.xlu0 %564  ;;  %v1586_v12 = vpop.permute.xlu2 %651 }
 0x1b9   : > { %v580_v60 = vsel %vm578_vm4, %v565_v56, %v1421_v0  ;;  %v584_v61 = vsel %vm578_vm4, %v1421_v0, %v565_v56  ;;  %v650_v62 = vpop.permute.xlu1 %649 }
 0x1ba   : > { %v1554_v63 = vmul.f32 %v1523_v48, %v584_v61  ;;  %v1557_v1 = vmul.f32 %v1525_v49, %v580_v60  ;;  %v657_v2 = vsel %vm655_vm5, %v642_v7, %v650_v62  ;;  %v661_v3 = vsel %vm655_vm5, %v650_v62, %v642_v7 }
 0x1bb   : > { %v1570_v0 = vmul.f32 %v1535_v54, %v661_v3  ;;  %v1573_v6 = vmul.f32 %v1537_v55, %v657_v2 }
 0x1be   : > { %992 = vrot.lane.b32.xlu2 %v1302_v32, %s1216_s16  ;;  %990 = vrot.lane.b32.xlu0 %v1372_v50, %s1216_s16 }
 0x1bf   : > { %986 = vrot.lane.b32.xlu1 %v1322_v38, %s1216_s16 }
 0x1c0   : > { %v764_v20 = vpop.permute.xlu0 %763  ;;  %v1622_v16 = vpop.permute.xlu2 %757 }
 0x1c1   : > { %v756_v21 = vpop.permute.xlu1 %755 }
 0x1c2   : > { %v771_v26 = vsel %vm769_vm6, %v756_v21, %v764_v20  ;;  %v775_v33 = vsel %vm769_vm6, %v764_v20, %v756_v21 }
 0x1c3   : > { %v1611_v36 = vmul.f32 %v1592_v15, %v771_v26  ;;  %v1614_v37 = vmul.f32 %v1594_v18, %v775_v33 }
 0x1c5   : > { %1900 = vst [vmem:[#allocation4_spill] sm:$0xff] %v1614_v37 }
 0x1c6   : > { %994 = vrot.lane.b32.xlu0 %v1324_v39, %s1216_s16 }
 0x1c8   : > { %v462_v60 = vpop.permute.xlu0 %461  ;;  %v1624_v2 = vpop.permute.xlu2 %830 }
 0x1c9   : > { %v424_v17 = vpop.permute.xlu1 %423  ;;  %v476_v56 = vsel %vm473_vm2, %v462_v60, %v1464_v19  ;;  %v480_v45 = vsel %vm473_vm2, %v1464_v19, %v462_v60 }
 0x1ca   : > { %v493_v52 = vmul.f32 %v1450_v13, %v480_v45  ;;  %v494_v28 = vmul.f32 %v1452_v14, %v476_v56 }
 0x1d0   : > { %v575_v61 = vpop.permute.xlu0 %574  ;;  %v1630_v20 = vpop.permute.xlu2 %840 }
 0x1d1   : > { %v567_v62 = vpop.permute.xlu1 %566 }
 0x1d8   : > { %v1626_v3 = vpop.permute.xlu0 %643  ;;  %v426_v33 = vpop.permute.xlu2 %425 }
 0x1d9   : > { %v1628_v8 = vpop.permute.xlu1 %765 }
 0x1e0   : > { %v1632_v21 = vpop.permute.xlu0 %842  ;;  %v569_v19 = vpop.permute.xlu2 %568 }
 0x1e1   : > { %v464_v26 = vpop.permute.xlu1 %463 }
 0x1e8   : > { %v472_v11 = vpop.permute.xlu0 %471 }
 0x1e9   : > { %v477_v10 = vsel %vm473_vm2, %v464_v26, %v472_v11  ;;  %v481_v7 = vsel %vm473_vm2, %v472_v11, %v464_v26  ;;  %v1644_v9 = vpop.permute.xlu1 %834  ;;  %v1901_v11 = vpack.c.bf16 %v1477_v24, %v1471_v22  ;;  %v436_v22 = vsel %vm429_vm3, %v424_v17, %v1521_v47 }
 0x1ea   : > { %v495_v51 = vmul.f32 %v1450_v13, %v481_v7  ;;  %v496_v27 = vmul.f32 %v1452_v14, %v477_v10  ;;  %v1140_v13 = vld [vmem:[%s1892_s6 + $0x4] sm:$0xf]  ;;  %v1902_v14 = vpack.c.bf16 %v1480_v25, %v1474_v23  ;;  %v581_v24 = vsel %vm578_vm4, %v567_v62, %v575_v61  ;;  %v1681_v10 = vpop.permute.xlu2 %919 }
 0x1eb   : > { %v448_v25 = vmul.f32 %v1493_v29, %v436_v22  ;;  %v452_v22 = vld [vmem:[%s1892_s6] sm:$0xf] }
 0x1ec   : > { %v501_v35 = vpack.c.bf16 %v495_v51, %v493_v52  ;;  %v502_v37 = vpack.c.bf16 %v496_v27, %v494_v28  ;;  %v432_v27 = vsel %vm429_vm3, %v1521_v47, %v424_v17  ;;  %v585_v28 = vsel %vm578_vm4, %v575_v61, %v567_v62 }
 0x1ed   : > { %v449_v51 = vmul.f32 %v1495_v30, %v432_v27  ;;  %v598_v17 = vmul.f32 %v1523_v48, %v585_v28  ;;  %v599_v61 = vmul.f32 %v1525_v49, %v581_v24  ;;  %v721_v27 = vpack.c.bf16 %v1380_v53, %v1344_v43 }
 0x1ee   : > { %513 = vmatpush.bf16.msra.mxu2 %v501_v35  ;;  %526 = vmatpush.bf16.msra.mxu3 %v502_v37  ;;  %v1905_v24 = vpack.c.bf16 %v1554_v63, %v1542_v57  ;;  %v718_v43 = vpack.c.bf16 %v1322_v38, %v1300_v31  ;;  %v658_v53 = vsel %vm655_vm5, %v1626_v3, %v1586_v12 }
 0x1ef   : > { %v676_v57 = vmul.f32 %v1537_v55, %v658_v53 }
 0x1f0   : > { %v1650_v60 = vpop.permute.xlu0 %832 }
 0x1f1   : > { %v1652_v34 = vpop.permute.xlu1 %838 }
 0x1f2   : > { %514 = vmatpush.bf16.msra.mxu2 %v1901_v11  ;;  %527 = vmatpush.bf16.msra.mxu3 %v1902_v14 }
 0x1f5   : > { %1141 = vmatmul.msk.bf16.vlgmr.msra.gmra.mxu2 %vm503_vm7, %v1140_v13  ;;  %1142 = vmatmul.msk.bf16.vlgmr.msra.gmra.mxu3 %vm503_vm7, %v1140_v13 }
 0x1f8   : > { %v418_v23 = vpop.permute.xlu0 %417 }
 0x1f9   : > { %v433_v52 = vsel %vm429_vm3, %v418_v23, %v426_v33  ;;  %v437_v7 = vsel %vm429_vm3, %v426_v33, %v418_v23  ;;  %v577_v47 = vpop.permute.xlu1 %576 }
 0x1fa   : > { %v450_v35 = vmul.f32 %v1493_v29, %v437_v7  ;;  %v451_v37 = vmul.f32 %v1495_v30, %v433_v52  ;;  %v582_v45 = vsel %vm578_vm4, %v569_v19, %v577_v47  ;;  %v586_v56 = vsel %vm578_vm4, %v577_v47, %v569_v19 }
 0x1fb   : > { %v600_v62 = vmul.f32 %v1523_v48, %v586_v56  ;;  %v601_v26 = vmul.f32 %v1525_v49, %v582_v45  ;;  %v1903_v19 = vpack.c.bf16 %v1513_v42, %v1507_v40  ;;  %v1904_v48 = vpack.c.bf16 %v1516_v44, %v1510_v41  ;;  %v1146_v41 = vld [vmem:[%s1892_s6 + $0x8] sm:$0xf] }
 0x1fc   : > { %v455_v33 = vpack.c.bf16 %v450_v35, %v448_v25  ;;  %v456_v11 = vpack.c.bf16 %v451_v37, %v449_v51  ;;  %v720_v49 = vpack.c.bf16 %v1372_v50, %v1352_v46  ;;  %v1906_v40 = vpack.c.bf16 %v1557_v1, %v1545_v59  ;;  %v1717_v46 = vpop.permute.xlu2 %909  ;;  %v1150_v51 = vld [vmem:[%s1892_s6 + $0xc] sm:$0xf] }
 0x1fd   : > { %v606_v13 = vpack.c.bf16 %v600_v62, %v598_v17  ;;  %v607_v29 = vpack.c.bf16 %v601_v26, %v599_v61  ;;  %v719_v50 = vpack.c.bf16 %v1324_v39, %v1302_v32  ;;  %v662_v42 = vsel %vm655_vm5, %v1586_v12, %v1626_v3 }
 0x1fe   : > { %542 = vmatpush.bf16.msrb.mxu2 %v455_v33  ;;  %555 = vmatpush.bf16.msrb.mxu3 %v456_v11  ;;  %v675_v44 = vmul.f32 %v1535_v54, %v662_v42  ;;  %v1907_v25 = vpack.c.bf16 %v1570_v0, %v1564_v4  ;;  %v772_v52 = vsel %vm769_vm6, %v1622_v16, %v1628_v8  ;;  %v1160_v0 = vld [vmem:[%s1893_s7 + $0x6] ss:$8 sm:$0x3]  ;;  %v1911_v42 = vld [vmem:[#allocation4_spill] sm:$0xff] }
 0x1ff   : > { %617 = vmatpush.bf16.msrb.mxu0 %v606_v13  ;;  %630 = vmatpush.bf16.msrb.mxu1 %v607_v29  ;;  %v776_v4 = vsel %vm769_vm6, %v1628_v8, %v1622_v16  ;;  %v858_v7 = vperm.slane %v1160_v0, 0  ;;  %v859_v47 = vperm.slane %v1160_v0, 1  ;;  %v849_v16 = vsel %vm846_vm8, %v1644_v9, %v1632_v21 }
 0x200   : > { %v1693_v30 = vpop.permute.xlu0 %911  ;;  %v853_v8 = vsel %vm846_vm8, %v1632_v21, %v1644_v9  ;;  %v848_v35 = vsel %vm846_vm8, %v1650_v60, %v1630_v20  ;;  %v852_v37 = vsel %vm846_vm8, %v1630_v20, %v1650_v60  ;;  %v847_v17 = vsel %vm846_vm8, %v1624_v2, %v1652_v34 }
 0x201   : > { %v646_v14 = vpop.permute.xlu1 %645  ;;  %v851_v9 = vsel %vm846_vm8, %v1652_v34, %v1624_v2  ;;  %v866_v11 = vmul.f32 %v858_v7, %v849_v16  ;;  %v867_v13 = vmul.f32 %v859_v47, %v853_v8  ;;  %v864_v29 = vmul.f32 %v858_v7, %v848_v35 }
 0x202   : > { %543 = vmatpush.bf16.msrb.mxu2 %v1903_v19  ;;  %556 = vmatpush.bf16.msrb.mxu3 %v1904_v48 }
 0x203   : > { %618 = vmatpush.bf16.msrb.mxu0 %v1905_v24  ;;  %631 = vmatpush.bf16.msrb.mxu1 %v1906_v40 }
 0x204   : > { %v768_v3 = vpop.permute.xlu2 %767 }
 0x205   : > { %1143 = vmatmul.msk.bf16.vlgmr.msrb.gmra.mxu2 %vm503_vm7, %v452_v22  ;;  %1144 = vmatmul.msk.bf16.vlgmr.msrb.gmra.mxu3 %vm503_vm7, %v452_v22 }
 0x206   : > { %1147 = vmatmul.msk.bf16.vlgmr.msrb.gmra.mxu0 %vm503_vm7, %v1146_v41  ;;  %1148 = vmatmul.msk.bf16.vlgmr.msrb.gmra.mxu1 %vm503_vm7, %v1146_v41 }
 0x207   : > { %731 = vmatpush.bf16.msra.mxu0 %v720_v49  ;;  %744 = vmatpush.bf16.msra.mxu1 %v721_v27  ;;  %v862_v49 = vmul.f32 %v858_v7, %v847_v17  ;;  %v863_v27 = vmul.f32 %v859_v47, %v851_v9 }
 0x208   : > { %v654_v31 = vpop.permute.xlu0 %653 }
 0x209   : > { %v659_v32 = vsel %vm655_vm5, %v646_v14, %v654_v31  ;;  %v663_v38 = vsel %vm655_vm5, %v654_v31, %v646_v14  ;;  %v1739_v39 = vpop.permute.xlu1 %907  ;;  %v865_v14 = vmul.f32 %v859_v47, %v852_v37  ;;  %v872_v40 = vpack.c.bf16 %v864_v29, %v862_v49  ;;  %v1912_v31 = vld [vmem:[#allocation3_spill] sm:$0xff] }
 0x20a   : > { %v677_v59 = vmul.f32 %v1535_v54, %v663_v38  ;;  %v678_v63 = vmul.f32 %v1537_v55, %v659_v32  ;;  %v1908_v54 = vpack.c.bf16 %v1573_v6, %v1567_v5  ;;  %v1153_v55 = vld [vmem:[%s1892_s6 + $0x10] sm:$0xf]  ;;  %v789_v5 = vmul.f32 %v1592_v15, %v772_v52  ;;  %v1157_v38 = vld [vmem:[%s1892_s6 + $0x14] sm:$0xf] }
 0x20b   : > { %732 = vmatpush.bf16.msra.mxu0 %v718_v43  ;;  %745 = vmatpush.bf16.msra.mxu1 %v719_v50  ;;  %v790_v6 = vmul.f32 %v1594_v18, %v776_v4  ;;  %v873_v41 = vpack.c.bf16 %v865_v14, %v863_v27  ;;  %v1909_v50 = vld [vmem:[#allocation2_spill] sm:$0xff]  ;;  %v1913_v32 = vpack.c.bf16 %v1911_v42, %v1912_v31 }
 0x20c   : > { %v683_v1 = vpack.c.bf16 %v677_v59, %v675_v44  ;;  %v684_v12 = vpack.c.bf16 %v678_v63, %v676_v57  ;;  %v837_v45 = vpop.permute.xlu2 %836  ;;  %v1910_v53 = vpack.c.bf16 %v1611_v36, %v1909_v50  ;;  %v1164_v44 = vld [vmem:[%s1893_s7 + $0x7] ss:$8 sm:$0x3]  ;;  %v1161_v57 = vld [vmem:[%s1892_s6 + $0x18] sm:$0xf]  ;;  %v926_v63 = vsel %vm923_vm9, %v1693_v30, %v1681_v10 }
 0x20d   : > { %v935_v36 = vperm.slane %v1164_v44, 0  ;;  %v936_v59 = vperm.slane %v1164_v44, 1 }
 0x20e   : > { %694 = vmatpush.bf16.msra.mxu2 %v683_v1  ;;  %707 = vmatpush.bf16.msra.mxu3 %v684_v12  ;;  %v930_v1 = vsel %vm923_vm9, %v1681_v10, %v1693_v30 }
 0x20f   : > { %v943_v4 = vmul.f32 %v935_v36, %v926_v63  ;;  %v944_v0 = vmul.f32 %v936_v59, %v930_v1 }
 0x210   : > { %v1745_v28 = vpop.permute.xlu0 %915 }
 0x211   : > { %v1747_v23 = vpop.permute.xlu1 %917  ;;  %v924_v12 = vsel %vm923_vm9, %v1739_v39, %v1745_v28 }
 0x212   : > { %695 = vmatpush.bf16.msra.mxu2 %v1907_v25  ;;  %708 = vmatpush.bf16.msra.mxu3 %v1908_v54  ;;  %v929_v54 = vsel %vm923_vm9, %v1747_v23, %v1717_v46 }
 0x213   : > { %v942_v8 = vmul.f32 %v936_v59, %v929_v54 }
 0x214   : > { %v989_v43 = vpop.permute.xlu2 %988 }
 0x215   : > { %1151 = vmatmul.msk.bf16.vlgmr.msra.gmra.mxu2 %vm503_vm7, %v1150_v51  ;;  %1152 = vmatmul.msk.bf16.vlgmr.msra.gmra.mxu3 %vm503_vm7, %v1150_v51  ;;  %v925_v51 = vsel %vm923_vm9, %v1717_v46, %v1747_v23 }
 0x216   : > { %1154 = vmatmul.msk.bf16.vlgmr.msra.gmra.mxu0 %vm503_vm7, %v1153_v55  ;;  %1155 = vmatmul.msk.bf16.vlgmr.msra.gmra.mxu1 %vm503_vm7, %v1153_v55  ;;  %v941_v16 = vmul.f32 %v935_v36, %v925_v51 }
 0x218   : > { %v760_v56 = vpop.permute.xlu0 %759 }
 0x219   : > { %v773_v21 = vsel %vm769_vm6, %v760_v56, %v768_v3  ;;  %v777_v61 = vsel %vm769_vm6, %v768_v3, %v760_v56  ;;  %v845_v62 = vpop.permute.xlu1 %844  ;;  %v928_v3 = vsel %vm923_vm9, %v1745_v28, %v1739_v39  ;;  %v1168_v39 = vld [vmem:[%s1893_s7 + $0x10] ss:$8 sm:$0x3] }
 0x21a   : > { %v791_v20 = vmul.f32 %v1592_v15, %v773_v21  ;;  %v792_v60 = vmul.f32 %v1594_v18, %v777_v61  ;;  %v850_v26 = vsel %vm846_vm8, %v837_v45, %v845_v62  ;;  %v854_v33 = vsel %vm846_vm8, %v845_v62, %v837_v45 }
 0x21b   : > { %v868_v34 = vmul.f32 %v858_v7, %v850_v26  ;;  %v869_v2 = vmul.f32 %v859_v47, %v854_v33  ;;  %v1012_v23 = vperm.slane %v1168_v39, 0  ;;  %v1013_v45 = vperm.slane %v1168_v39, 1  ;;  %v1165_v33 = vld [vmem:[%s1892_s6 + $0x1c] sm:$0xf] }
 0x21c   : > { %v797_v19 = vpack.c.bf16 %v791_v20, %v789_v5  ;;  %v798_v48 = vpack.c.bf16 %v792_v60, %v790_v6  ;;  %v939_v5 = vmul.f32 %v935_v36, %v924_v12  ;;  %v940_v6 = vmul.f32 %v936_v59, %v928_v3  ;;  %v999_v47 = vpop.permute.xlu2 %998 }
 0x21d   : > { %v874_v22 = vpack.c.bf16 %v868_v34, %v866_v11  ;;  %v875_v15 = vpack.c.bf16 %v869_v2, %v867_v13 }
 0x21e   : > { %808 = vmatpush.bf16.msrb.mxu2 %v797_v19  ;;  %821 = vmatpush.bf16.msrb.mxu3 %v798_v48  ;;  %v949_v17 = vpack.c.bf16 %v941_v16, %v939_v5  ;;  %v950_v9 = vpack.c.bf16 %v942_v8, %v940_v6 }
 0x21f   : > { %885 = vmatpush.bf16.msrb.mxu0 %v874_v22  ;;  %898 = vmatpush.bf16.msrb.mxu1 %v875_v15 }
 0x220   : > { %v1813_v18 = vpop.permute.xlu0 %984 }
 0x221   : > { %v914_v24 = vpop.permute.xlu1 %913 }
 0x222   : > { %809 = vmatpush.bf16.msrb.mxu2 %v1910_v53  ;;  %822 = vmatpush.bf16.msrb.mxu3 %v1913_v32 }
 0x223   : > { %886 = vmatpush.bf16.msrb.mxu0 %v872_v40  ;;  %899 = vmatpush.bf16.msrb.mxu1 %v873_v41 }
 0x224   : > { %v993_v34 = vpop.permute.xlu2 %992 }
 0x225   : > { %1158 = vmatmul.msk.bf16.vlgmr.msrb.gmra.mxu2 %vm503_vm7, %v1157_v38  ;;  %1159 = vmatmul.msk.bf16.vlgmr.msrb.gmra.mxu3 %vm503_vm7, %v1157_v38  ;;  %v1001_v2 = vsel %vm1000_vm10, %v1813_v18, %v993_v34  ;;  %v1005_v29 = vsel %vm1000_vm10, %v993_v34, %v1813_v18  ;;  %v1169_v18 = vld [vmem:[%s1892_s6 + $0x20] sm:$0xf] }
 0x226   : > { %1162 = vmatmul.msk.bf16.vlgmr.msrb.gmra.mxu0 %vm503_vm7, %v1161_v57  ;;  %1163 = vmatmul.msk.bf16.vlgmr.msrb.gmra.mxu1 %vm503_vm7, %v1161_v57  ;;  %v1016_v27 = vmul.f32 %v1012_v23, %v1001_v2  ;;  %v1017_v22 = vmul.f32 %v1013_v45, %v1005_v29 }
 0x228   : > { %v922_v25 = vpop.permute.xlu0 %921 }
 0x229   : > { %v927_v55 = vsel %vm923_vm9, %v914_v24, %v922_v25  ;;  %v931_v52 = vsel %vm923_vm9, %v922_v25, %v914_v24  ;;  %v997_v7 = vpop.permute.xlu1 %996 }
 0x22a   : > { %v945_v10 = vmul.f32 %v935_v36, %v927_v55  ;;  %v946_v30 = vmul.f32 %v936_v59, %v931_v52  ;;  %v1003_v46 = vsel %vm1000_vm10, %v989_v43, %v997_v7  ;;  %v1007_v37 = vsel %vm1000_vm10, %v997_v7, %v989_v43 }
 0x22b   : > { %v1020_v21 = vmul.f32 %v1012_v23, %v1003_v46  ;;  %v1021_v20 = vmul.f32 %v1013_v45, %v1007_v37 }
 0x22c   : > { %v951_v28 = vpack.c.bf16 %v945_v10, %v943_v4  ;;  %v952_v35 = vpack.c.bf16 %v946_v30, %v944_v0 }
 0x22e   : > { %962 = vmatpush.bf16.msra.mxu2 %v951_v28  ;;  %975 = vmatpush.bf16.msra.mxu3 %v952_v35 }
 0x230   : > { %v991_v56 = vpop.permute.xlu0 %990 }
 0x231   : > { %v1004_v61 = vsel %vm1000_vm10, %v991_v56, %v999_v47  ;;  %v1008_v62 = vsel %vm1000_vm10, %v999_v47, %v991_v56  ;;  %v987_v14 = vpop.permute.xlu1 %986 }
 0x232   : > { %v1022_v60 = vmul.f32 %v1012_v23, %v1004_v61  ;;  %v1023_v26 = vmul.f32 %v1013_v45, %v1008_v62  ;;  %963 = vmatpush.bf16.msra.mxu2 %v949_v17  ;;  %976 = vmatpush.bf16.msra.mxu3 %v950_v9 }
 0x234   : > { %v1028_v11 = vpack.c.bf16 %v1022_v60, %v1020_v21  ;;  %v1029_v13 = vpack.c.bf16 %v1023_v26, %v1021_v20 }
 0x235   : > { %1166 = vmatmul.msk.bf16.vlgmr.msra.gmra.mxu2 %vm503_vm7, %v1165_v33  ;;  %1167 = vmatmul.msk.bf16.vlgmr.msra.gmra.mxu3 %vm503_vm7, %v1165_v33 }
 0x236   : > { %1039 = vmatpush.bf16.msra.mxu0 %v1028_v11  ;;  %1052 = vmatpush.bf16.msra.mxu1 %v1029_v13 }
 0x238   : > { %v995_v19 = vpop.permute.xlu0 %994 }
 0x239   : > { %v1002_v48 = vsel %vm1000_vm10, %v987_v14, %v995_v19  ;;  %v1006_v49 = vsel %vm1000_vm10, %v995_v19, %v987_v14 }
 0x23a   : > { %v1018_v15 = vmul.f32 %v1012_v23, %v1002_v48  ;;  %v1019_v24 = vmul.f32 %v1013_v45, %v1006_v49 }
 0x23c   : > { %v1026_v40 = vpack.c.bf16 %v1018_v15, %v1016_v27  ;;  %v1027_v41 = vpack.c.bf16 %v1019_v24, %v1017_v22 }
 0x23e   : > { %1040 = vmatpush.bf16.msra.mxu0 %v1026_v40  ;;  %1053 = vmatpush.bf16.msra.mxu1 %v1027_v41 }
 0x241   : > { %1170 = vmatmul.msk.bf16.vlgmr.msra.gmra.mxu0 %vm503_vm7, %v1169_v18  ;;  %1171 = vmatmul.msk.bf16.vlgmr.msra.gmra.mxu1 %vm503_vm7, %v1169_v18 }
 0x278   : > { %v516_v43 = vpop.f32.mrf.mxu2  ;;  %v529_v50 = vpop.f32.mrf.mxu3 }
 0x280   : > { %v518_v58 = vpop.f32.mrf.mxu2  ;;  %v531_v53 = vpop.f32.mrf.mxu3 }
 0x283   : > { %v620_v42 = vpop.f32.mrf.mxu0  ;;  %v633_v31 = vpop.f32.mrf.mxu1 }
 0x288   : > { %v545_v32 = vpop.f32.mrf.mxu2  ;;  %v558_v38 = vpop.f32.mrf.mxu3 }
 0x289   : > { %v546_v30 = vadd.f32 %v545_v32, %v516_v43  ;;  %v559_v5 = vadd.f32 %v558_v38, %v529_v50 }
 0x28b   : > { %v622_v44 = vpop.f32.mrf.mxu0  ;;  %v635_v57 = vpop.f32.mrf.mxu1  ;;  %v637_v47 = vadd.f32 %v620_v42, %v546_v30  ;;  %v638_v16 = vadd.f32 %v633_v31, %v559_v5 }
 0x290   : > { %v547_v36 = vpop.f32.mrf.mxu2  ;;  %v560_v59 = vpop.f32.mrf.mxu3 }
 0x293   : > { %v734_v63 = vpop.f32.mrf.mxu0  ;;  %v747_v1 = vpop.f32.mrf.mxu1 }
 0x298   : > { %v697_v12 = vpop.f32.mrf.mxu2  ;;  %v710_v3 = vpop.f32.mrf.mxu3 }
 0x299   : > { %v714_v39 = vadd.f32 %v697_v12, %v637_v47  ;;  %v715_v28 = vadd.f32 %v710_v3, %v638_v16 }
 0x29b   : > { %v736_v25 = vpop.f32.mrf.mxu0  ;;  %v749_v51 = vpop.f32.mrf.mxu1  ;;  %v751_v46 = vadd.f32 %v734_v63, %v714_v39  ;;  %v752_v23 = vadd.f32 %v747_v1, %v715_v28 }
 0x2a0   : > { %v699_v54 = vpop.f32.mrf.mxu2  ;;  %v712_v55 = vpop.f32.mrf.mxu3 }
 0x2a3   : > { %v888_v52 = vpop.f32.mrf.mxu0  ;;  %v901_v4 = vpop.f32.mrf.mxu1 }
 0x2a8   : > { %v811_v0 = vpop.f32.mrf.mxu2  ;;  %v824_v10 = vpop.f32.mrf.mxu3 }
 0x2a9   : > { %v828_v37 = vadd.f32 %v811_v0, %v751_v46  ;;  %v829_v45 = vadd.f32 %v824_v10, %v752_v23 }
 0x2ab   : > { %v890_v6 = vpop.f32.mrf.mxu0  ;;  %v903_v7 = vpop.f32.mrf.mxu1  ;;  %v905_v9 = vadd.f32 %v888_v52, %v828_v37  ;;  %v906_v21 = vadd.f32 %v901_v4, %v829_v45 }
 0x2b0   : > { %v813_v8 = vpop.f32.mrf.mxu2  ;;  %v826_v35 = vpop.f32.mrf.mxu3 }
 0x2b8   : > { %v965_v56 = vpop.f32.mrf.mxu2  ;;  %v978_v17 = vpop.f32.mrf.mxu3 }
 0x2b9   : > { %v982_v61 = vadd.f32 %v965_v56, %v905_v9  ;;  %v983_v62 = vadd.f32 %v978_v17, %v906_v21 }
 0x2be   : > { %v1042_v20 = vpop.f32.mrf.mxu0  ;;  %v1055_v60 = vpop.f32.mrf.mxu1 }
 0x2bf   : > { %v1059_v26 = vadd.f32 %v1042_v20, %v982_v61  ;;  %v1060_v33 = vadd.f32 %v1055_v60, %v983_v62 }
 0x2c0   : > { %v967_v11 = vpop.f32.mrf.mxu2  ;;  %v980_v13 = vpop.f32.mrf.mxu3 }
 0x2c1   : > { %1061 = vst [vmem:[%s279_s30] sm:$0xff] %v1059_v26 }
 0x2c2   : > { %1062 = vst [vmem:[%s279_s30 + $0x8] sm:$0xff] %v1060_v33 }
 0x2c6   : > { %v1044_v34 = vpop.f32.mrf.mxu0  ;;  %v1057_v2 = vpop.f32.mrf.mxu1 }
 0x2c7 PF: > { %s18_s26 = sadd.s32 1, %s1205_s26  }
 0x2c8   : > { %p15_p4 = scmp.ge.s32.totalorder %s18_s26, 4  }
 0x2ca   :  { %17 = sbr.rel (!%p15_p4) target bundleno = 1 (0x1), region = 93 }

</bundles_post_ra>
